<compile_context>
chip_gen: v6e
topology: v6e:2x2x1
jax: 0.10.0
libtpu: 0.0.40
codegen_flags: <defaults>
</compile_context>

<pallas_src>
import functools

import jax
import jax.numpy as jnp
from jax.experimental import pallas as pl
from jax.experimental.pallas import tpu as pltpu


def _attention_batch_kernel(x_ref, wqkv_ref, bqkv_ref, wproj_ref, bproj_ref,
                            o_ref, ctx_ref, *, num_heads, head_dim):
    """One batch element of multi-head self-attention (mask=None)."""
    H, D = num_heads, head_dim
    C = H * D

    x = x_ref[...]                      # (T, C)   bf16
    wqkv = wqkv_ref[...]                # (C, 3C)  bf16 (q-columns pre-scaled)

    # Fused Q/K/V projection: one full-width matmul, f32 accumulation + bias.
    qkv = jnp.dot(x, wqkv, preferred_element_type=jnp.float32) + bqkv_ref[...]  # (T, 3C)

    # Per-head attention (static unroll; H is small and known at trace time).
    # qkv column layout matches PyTorch's .reshape(B, T, 3, H, D): [q|k|v][head][dim].
    for h in range(H):
        q = qkv[:, h * D:(h + 1) * D]                    # (T, D) f32, already scaled
        k = qkv[:, C + h * D:C + (h + 1) * D]            # (T, D) f32
        v = qkv[:, 2 * C + h * D:2 * C + (h + 1) * D]    # (T, D) f32

        logits = jnp.dot(q.astype(jnp.bfloat16), k.astype(jnp.bfloat16).T,
                         preferred_element_type=jnp.float32)          # (T, T)
        logits = logits - jnp.max(logits, axis=-1, keepdims=True)
        p = jnp.exp(logits)                                           # unnormalized
        denom = jnp.sum(p, axis=-1, keepdims=True)                    # (T, 1)

        head = jnp.dot(p.astype(jnp.bfloat16), v.astype(jnp.bfloat16),
                       preferred_element_type=jnp.float32)            # (T, D)
        # Deferred softmax normalization: scale the (T, D) result, not the (T, T) probs.
        head = head * pl.reciprocal(denom, approx=True)

        ctx_ref[:, h * D:(h + 1) * D] = head.astype(jnp.bfloat16)

    # Single full-width output projection (contraction K = C), f32 acc + bias.
    out = jnp.dot(ctx_ref[...], wproj_ref[...],
                  preferred_element_type=jnp.float32) + bproj_ref[...]
    o_ref[...] = out.astype(o_ref.dtype)


def _vmem_limit_bytes(B, T, C, out_bytes):
    # Working set: 2x bf16 x-block, 2x out-block, resident weights/biases,
    # bf16 ctx scratch, f32 qkv result, f32 logits + p, plus headroom.
    est = (2 * T * C * 2 +              # x double buffer (bf16)
           2 * T * C * out_bytes +      # out double buffer
           C * 3 * C * 2 + C * C * 2 +  # W_qkv, W_proj (bf16)
           3 * C * 4 + C * 4 +          # biases (f32)
           T * C * 2 +                  # ctx scratch (bf16)
           T * 3 * C * 4 +              # qkv (f32)
           2 * T * T * 4 +              # logits + p (f32)
           (4 << 20))                   # headroom
    return int(min(max(est, 16 << 20), 64 << 20))


def attention_forward(x, w_qkv, b_qkv, w_proj, b_proj, *, num_heads: int):
    """x: (B, T, C); w_qkv: (C, 3C) = qkv.weight.T; b_qkv: (3C,);
    w_proj: (C, C) = proj.weight.T; b_proj: (C,)."""
    B, T, C = x.shape
    H = num_heads
    assert C % H == 0, "dim should be divisible by num_heads"
    D = C // H
    scale = float(D) ** -0.5

    # Fold the attention scale into the Q columns of the fused QKV weight/bias.
    col_scale = jnp.concatenate(
        [jnp.full((C,), scale, dtype=jnp.float32),
         jnp.ones((2 * C,), dtype=jnp.float32)])
    w_qkv_s = (w_qkv.astype(jnp.float32) * col_scale[None, :]).astype(jnp.bfloat16)
    b_qkv_s = (b_qkv.astype(jnp.float32) * col_scale).reshape(1, 3 * C)

    x_bf = x.astype(jnp.bfloat16)
    w_proj_bf = w_proj.astype(jnp.bfloat16)
    b_proj2 = b_proj.reshape(1, C).astype(jnp.float32)

    out_bytes = jnp.dtype(x.dtype).itemsize
    kernel = functools.partial(_attention_batch_kernel, num_heads=H, head_dim=D)

    return pl.pallas_call(
        kernel,
        out_shape=jax.ShapeDtypeStruct((B, T, C), x.dtype),
        grid_spec=pltpu.PrefetchScalarGridSpec(
            num_scalar_prefetch=0,
            grid=(B,),
            in_specs=[
                pl.BlockSpec((pl.Squeezed(), T, C), lambda b: (b, 0, 0)),  # x
                # Grid-resident parameters (constant index maps => DMA'd once).
                pl.BlockSpec((C, 3 * C), lambda b: (0, 0)),                # W_qkv (scaled)
                pl.BlockSpec((1, 3 * C), lambda b: (0, 0)),                # b_qkv (scaled)
                pl.BlockSpec((C, C), lambda b: (0, 0)),                    # W_proj
                pl.BlockSpec((1, C), lambda b: (0, 0)),                    # b_proj
            ],
            out_specs=pl.BlockSpec((pl.Squeezed(), T, C), lambda b: (b, 0, 0)),
            scratch_shapes=[pltpu.VMEM((T, C), jnp.bfloat16)],             # ctx slab
        ),
        compiler_params=pltpu.CompilerParams(
            dimension_semantics=("parallel",),
            vmem_limit_bytes=_vmem_limit_bytes(B, T, C, out_bytes)),
    )(x_bf, w_qkv_s, b_qkv_s, w_proj_bf, b_proj2)


def _variance_scaling(key, shape, fan_in, scale=1.0, dtype=jnp.float32):
    # Deterministic stand-in for variance_scaling_ (fan-in normal).
    std = (scale / float(fan_in)) ** 0.5
    return std * jax.random.normal(key, shape, dtype=dtype)


def _reference(x, w_qkv, b_qkv, w_proj, b_proj, num_heads):
    # Pure-f32 reference matching the PyTorch forward (mask=None).
    B, T, C = x.shape
    D = C // num_heads
    qkv = x @ w_qkv + b_qkv                                   # (B, T, 3C)
    qkv = qkv.reshape(B, T, 3, num_heads, D).transpose(2, 0, 3, 1, 4)
    q, k, v = qkv[0], qkv[1], qkv[2]                          # (B, H, T, D)
    attn = jnp.einsum("bhtd,bhsd->bhts", q, k) * (D ** -0.5)
    attn = jax.nn.softmax(attn, axis=-1)
    ctx = jnp.einsum("bhts,bhsd->bhtd", attn, v)              # (B, H, T, D)
    ctx = ctx.transpose(0, 2, 1, 3).reshape(B, T, C)
    return ctx @ w_proj + b_proj


if __name__ == "__main__":
    B, T, C = 2, 8, 32
    num_heads = 4

    key = jax.random.PRNGKey(0)
    kx, kq, kp, kbq, kbp = jax.random.split(key, 5)

    x = jax.random.normal(kx, (B, T, C), dtype=jnp.float32)

    # Parameters (PyTorch Linear weight is (out, in); we store the transpose).
    # Small non-zero biases so the bias paths in the kernel are exercised.
    w_qkv = _variance_scaling(kq, (C, 3 * C), fan_in=C)       # qkv.weight.T
    b_qkv = 0.1 * jax.random.normal(kbq, (3 * C,), dtype=jnp.float32)
    w_proj = _variance_scaling(kp, (C, C), fan_in=C)          # proj.weight.T
    b_proj = 0.1 * jax.random.normal(kbp, (C,), dtype=jnp.float32)

    out = attention_forward(x, w_qkv, b_qkv, w_proj, b_proj, num_heads=num_heads)
    out = jax.block_until_ready(out)

    ref = _reference(x, w_qkv, b_qkv, w_proj, b_proj, num_heads)
    assert out.shape == (B, T, C)
    # bf16 MXU operands + approximate reciprocal => tolerance set for bf16 rounding.
    assert jnp.allclose(out, ref, atol=5e-2, rtol=5e-2), "mismatch vs reference"

    print("KERNEL_OK")
</pallas_src>

<mosaic_0001>
module attributes {stable_mosaic.version = 11 : i64} {
  func.func @_attention_batch_kernel(%arg0: i32, %arg1: memref<1x8x32xbf16, #tpu.memory_space<vmem>>, %arg2: memref<32x96xbf16, #tpu.memory_space<vmem>>, %arg3: memref<1x96xf32, #tpu.memory_space<vmem>>, %arg4: memref<32x32xbf16, #tpu.memory_space<vmem>>, %arg5: memref<1x32xf32, #tpu.memory_space<vmem>>, %arg6: memref<1x8x32xf32, #tpu.memory_space<vmem>>, %arg7: memref<8x32xbf16, #tpu.memory_space<vmem>>) attributes {dimension_semantics = [#tpu.dimension_semantics<parallel>], iteration_bounds = array<i64: 2>, scalar_prefetch = 0 : i64, scratch_operands = 1 : i64, tpu.core_type = #tpu.core_type<tc>, window_params = [{transform_indices = @transform_0, window_bounds = array<i64: 1, 8, 32>}, {pipeline_mode = #tpu.pipeline_mode<synchronous>, transform_indices = @transform_1, window_bounds = array<i64: 32, 96>}, {pipeline_mode = #tpu.pipeline_mode<synchronous>, transform_indices = @transform_2, window_bounds = array<i64: 1, 96>}, {pipeline_mode = #tpu.pipeline_mode<synchronous>, transform_indices = @transform_3, window_bounds = array<i64: 32, 32>}, {pipeline_mode = #tpu.pipeline_mode<synchronous>, transform_indices = @transform_4, window_bounds = array<i64: 1, 32>}, {transform_indices = @transform_5, window_bounds = array<i64: 1, 8, 32>}]} {
    %c0 = arith.constant 0 : index
    %c0_0 = arith.constant 0 : index
    %c0_1 = arith.constant 0 : index
    %0 = vector.load %arg1[%c0, %c0_0, %c0_1] : memref<1x8x32xbf16, #tpu.memory_space<vmem>>, vector<1x8x32xbf16>
    %1 = vector.shape_cast %0 : vector<1x8x32xbf16> to vector<8x32xbf16>
    %c0_2 = arith.constant 0 : index
    %c0_3 = arith.constant 0 : index
    %2 = vector.load %arg2[%c0_2, %c0_3] : memref<32x96xbf16, #tpu.memory_space<vmem>>, vector<32x96xbf16>
    %cst = arith.constant dense<0.000000e+00> : vector<8x96xf32>
    %3 = tpu.matmul %1, %2, %cst {dimension_numbers = #tpu.dot_dimension_numbers<[1], [0], [0], [1], [0, 0, 1, 1], [], []>} : vector<8x32xbf16>, vector<32x96xbf16>, vector<8x96xf32> -> vector<8x96xf32>
    %c0_4 = arith.constant 0 : index
    %c0_5 = arith.constant 0 : index
    %4 = vector.load %arg3[%c0_4, %c0_5] : memref<1x96xf32, #tpu.memory_space<vmem>>, vector<1x96xf32>
    %5 = vector.broadcast %4 : vector<1x96xf32> to vector<8x96xf32>
    %6 = arith.addf %3, %5 : vector<8x96xf32>
    %7 = vector.extract_strided_slice %6 {offsets = [0, 0], sizes = [8, 8], strides = [1, 1]} : vector<8x96xf32> to vector<8x8xf32>
    %8 = vector.extract_strided_slice %6 {offsets = [0, 32], sizes = [8, 8], strides = [1, 1]} : vector<8x96xf32> to vector<8x8xf32>
    %9 = vector.extract_strided_slice %6 {offsets = [0, 64], sizes = [8, 8], strides = [1, 1]} : vector<8x96xf32> to vector<8x8xf32>
    %10 = arith.truncf %7 : vector<8x8xf32> to vector<8x8xbf16>
    %11 = arith.truncf %8 : vector<8x8xf32> to vector<8x8xbf16>
    %12 = tpu.transpose %11, [1, 0] : vector<8x8xbf16> -> vector<8x8xbf16>
    %cst_6 = arith.constant dense<0.000000e+00> : vector<8x8xf32>
    %13 = tpu.matmul %10, %12, %cst_6 {dimension_numbers = #tpu.dot_dimension_numbers<[1], [0], [0], [1], [0, 0, 1, 1], [], []>} : vector<8x8xbf16>, vector<8x8xbf16>, vector<8x8xf32> -> vector<8x8xf32>
    %cst_7 = arith.constant dense<0xFF800000> : vector<8xf32>
    %14 = vector.multi_reduction <maximumf>, %13, %cst_7 [1] : vector<8x8xf32> to vector<8xf32>
    %15 = vector.shape_cast %14 : vector<8xf32> to vector<8x1xf32>
    %16 = vector.broadcast %15 : vector<8x1xf32> to vector<8x8xf32>
    %17 = arith.subf %13, %16 : vector<8x8xf32>
    %18 = math.exp %17 : vector<8x8xf32>
    %cst_8 = arith.constant dense<0.000000e+00> : vector<8xf32>
    %19 = vector.multi_reduction <add>, %18, %cst_8 [1] : vector<8x8xf32> to vector<8xf32>
    %20 = vector.shape_cast %19 : vector<8xf32> to vector<8x1xf32>
    %21 = arith.truncf %18 : vector<8x8xf32> to vector<8x8xbf16>
    %22 = arith.truncf %9 : vector<8x8xf32> to vector<8x8xbf16>
    %cst_9 = arith.constant dense<0.000000e+00> : vector<8x8xf32>
    %23 = tpu.matmul %21, %22, %cst_9 {dimension_numbers = #tpu.dot_dimension_numbers<[1], [0], [0], [1], [0, 0, 1, 1], [], []>} : vector<8x8xbf16>, vector<8x8xbf16>, vector<8x8xf32> -> vector<8x8xf32>
    %24 = tpu.reciprocal %20 {approx = true} : vector<8x1xf32> -> vector<8x1xf32>
    %25 = vector.broadcast %24 : vector<8x1xf32> to vector<8x8xf32>
    %26 = arith.mulf %23, %25 : vector<8x8xf32>
    %27 = arith.truncf %26 : vector<8x8xf32> to vector<8x8xbf16>
    %c0_10 = arith.constant 0 : index
    %c0_11 = arith.constant 0 : index
    %28 = vector.load %arg7[%c0_10, %c0_11] : memref<8x32xbf16, #tpu.memory_space<vmem>>, vector<8x8xbf16>
    tpu.vector_store %arg7[%c0_10, %c0_11], %27 {strides = array<i32>} : memref<8x32xbf16, #tpu.memory_space<vmem>>, vector<8x8xbf16>,
    %29 = vector.extract_strided_slice %6 {offsets = [0, 8], sizes = [8, 8], strides = [1, 1]} : vector<8x96xf32> to vector<8x8xf32>
    %30 = vector.extract_strided_slice %6 {offsets = [0, 40], sizes = [8, 8], strides = [1, 1]} : vector<8x96xf32> to vector<8x8xf32>
    %31 = vector.extract_strided_slice %6 {offsets = [0, 72], sizes = [8, 8], strides = [1, 1]} : vector<8x96xf32> to vector<8x8xf32>
    %32 = arith.truncf %29 : vector<8x8xf32> to vector<8x8xbf16>
    %33 = arith.truncf %30 : vector<8x8xf32> to vector<8x8xbf16>
    %34 = tpu.transpose %33, [1, 0] : vector<8x8xbf16> -> vector<8x8xbf16>
    %cst_12 = arith.constant dense<0.000000e+00> : vector<8x8xf32>
    %35 = tpu.matmul %32, %34, %cst_12 {dimension_numbers = #tpu.dot_dimension_numbers<[1], [0], [0], [1], [0, 0, 1, 1], [], []>} : vector<8x8xbf16>, vector<8x8xbf16>, vector<8x8xf32> -> vector<8x8xf32>
    %cst_13 = arith.constant dense<0xFF800000> : vector<8xf32>
    %36 = vector.multi_reduction <maximumf>, %35, %cst_13 [1] : vector<8x8xf32> to vector<8xf32>
    %37 = vector.shape_cast %36 : vector<8xf32> to vector<8x1xf32>
    %38 = vector.broadcast %37 : vector<8x1xf32> to vector<8x8xf32>
    %39 = arith.subf %35, %38 : vector<8x8xf32>
    %40 = math.exp %39 : vector<8x8xf32>
    %cst_14 = arith.constant dense<0.000000e+00> : vector<8xf32>
    %41 = vector.multi_reduction <add>, %40, %cst_14 [1] : vector<8x8xf32> to vector<8xf32>
    %42 = vector.shape_cast %41 : vector<8xf32> to vector<8x1xf32>
    %43 = arith.truncf %40 : vector<8x8xf32> to vector<8x8xbf16>
    %44 = arith.truncf %31 : vector<8x8xf32> to vector<8x8xbf16>
    %cst_15 = arith.constant dense<0.000000e+00> : vector<8x8xf32>
    %45 = tpu.matmul %43, %44, %cst_15 {dimension_numbers = #tpu.dot_dimension_numbers<[1], [0], [0], [1], [0, 0, 1, 1], [], []>} : vector<8x8xbf16>, vector<8x8xbf16>, vector<8x8xf32> -> vector<8x8xf32>
    %46 = tpu.reciprocal %42 {approx = true} : vector<8x1xf32> -> vector<8x1xf32>
    %47 = vector.broadcast %46 : vector<8x1xf32> to vector<8x8xf32>
    %48 = arith.mulf %45, %47 : vector<8x8xf32>
    %49 = arith.truncf %48 : vector<8x8xf32> to vector<8x8xbf16>
    %c0_16 = arith.constant 0 : index
    %c8 = arith.constant 8 : index
    %50 = vector.load %arg7[%c0_16, %c8] : memref<8x32xbf16, #tpu.memory_space<vmem>>, vector<8x8xbf16>
    tpu.vector_store %arg7[%c0_16, %c8], %49 {strides = array<i32>} : memref<8x32xbf16, #tpu.memory_space<vmem>>, vector<8x8xbf16>,
    %51 = vector.extract_strided_slice %6 {offsets = [0, 16], sizes = [8, 8], strides = [1, 1]} : vector<8x96xf32> to vector<8x8xf32>
    %52 = vector.extract_strided_slice %6 {offsets = [0, 48], sizes = [8, 8], strides = [1, 1]} : vector<8x96xf32> to vector<8x8xf32>
    %53 = vector.extract_strided_slice %6 {offsets = [0, 80], sizes = [8, 8], strides = [1, 1]} : vector<8x96xf32> to vector<8x8xf32>
    %54 = arith.truncf %51 : vector<8x8xf32> to vector<8x8xbf16>
    %55 = arith.truncf %52 : vector<8x8xf32> to vector<8x8xbf16>
    %56 = tpu.transpose %55, [1, 0] : vector<8x8xbf16> -> vector<8x8xbf16>
    %cst_17 = arith.constant dense<0.000000e+00> : vector<8x8xf32>
    %57 = tpu.matmul %54, %56, %cst_17 {dimension_numbers = #tpu.dot_dimension_numbers<[1], [0], [0], [1], [0, 0, 1, 1], [], []>} : vector<8x8xbf16>, vector<8x8xbf16>, vector<8x8xf32> -> vector<8x8xf32>
    %cst_18 = arith.constant dense<0xFF800000> : vector<8xf32>
    %58 = vector.multi_reduction <maximumf>, %57, %cst_18 [1] : vector<8x8xf32> to vector<8xf32>
    %59 = vector.shape_cast %58 : vector<8xf32> to vector<8x1xf32>
    %60 = vector.broadcast %59 : vector<8x1xf32> to vector<8x8xf32>
    %61 = arith.subf %57, %60 : vector<8x8xf32>
    %62 = math.exp %61 : vector<8x8xf32>
    %cst_19 = arith.constant dense<0.000000e+00> : vector<8xf32>
    %63 = vector.multi_reduction <add>, %62, %cst_19 [1] : vector<8x8xf32> to vector<8xf32>
    %64 = vector.shape_cast %63 : vector<8xf32> to vector<8x1xf32>
    %65 = arith.truncf %62 : vector<8x8xf32> to vector<8x8xbf16>
    %66 = arith.truncf %53 : vector<8x8xf32> to vector<8x8xbf16>
    %cst_20 = arith.constant dense<0.000000e+00> : vector<8x8xf32>
    %67 = tpu.matmul %65, %66, %cst_20 {dimension_numbers = #tpu.dot_dimension_numbers<[1], [0], [0], [1], [0, 0, 1, 1], [], []>} : vector<8x8xbf16>, vector<8x8xbf16>, vector<8x8xf32> -> vector<8x8xf32>
    %68 = tpu.reciprocal %64 {approx = true} : vector<8x1xf32> -> vector<8x1xf32>
    %69 = vector.broadcast %68 : vector<8x1xf32> to vector<8x8xf32>
    %70 = arith.mulf %67, %69 : vector<8x8xf32>
    %71 = arith.truncf %70 : vector<8x8xf32> to vector<8x8xbf16>
    %c0_21 = arith.constant 0 : index
    %c16 = arith.constant 16 : index
    %72 = vector.load %arg7[%c0_21, %c16] : memref<8x32xbf16, #tpu.memory_space<vmem>>, vector<8x8xbf16>
    tpu.vector_store %arg7[%c0_21, %c16], %71 {strides = array<i32>} : memref<8x32xbf16, #tpu.memory_space<vmem>>, vector<8x8xbf16>,
    %73 = vector.extract_strided_slice %6 {offsets = [0, 24], sizes = [8, 8], strides = [1, 1]} : vector<8x96xf32> to vector<8x8xf32>
    %74 = vector.extract_strided_slice %6 {offsets = [0, 56], sizes = [8, 8], strides = [1, 1]} : vector<8x96xf32> to vector<8x8xf32>
    %75 = vector.extract_strided_slice %6 {offsets = [0, 88], sizes = [8, 8], strides = [1, 1]} : vector<8x96xf32> to vector<8x8xf32>
    %76 = arith.truncf %73 : vector<8x8xf32> to vector<8x8xbf16>
    %77 = arith.truncf %74 : vector<8x8xf32> to vector<8x8xbf16>
    %78 = tpu.transpose %77, [1, 0] : vector<8x8xbf16> -> vector<8x8xbf16>
    %cst_22 = arith.constant dense<0.000000e+00> : vector<8x8xf32>
    %79 = tpu.matmul %76, %78, %cst_22 {dimension_numbers = #tpu.dot_dimension_numbers<[1], [0], [0], [1], [0, 0, 1, 1], [], []>} : vector<8x8xbf16>, vector<8x8xbf16>, vector<8x8xf32> -> vector<8x8xf32>
    %cst_23 = arith.constant dense<0xFF800000> : vector<8xf32>
    %80 = vector.multi_reduction <maximumf>, %79, %cst_23 [1] : vector<8x8xf32> to vector<8xf32>
    %81 = vector.shape_cast %80 : vector<8xf32> to vector<8x1xf32>
    %82 = vector.broadcast %81 : vector<8x1xf32> to vector<8x8xf32>
    %83 = arith.subf %79, %82 : vector<8x8xf32>
    %84 = math.exp %83 : vector<8x8xf32>
    %cst_24 = arith.constant dense<0.000000e+00> : vector<8xf32>
    %85 = vector.multi_reduction <add>, %84, %cst_24 [1] : vector<8x8xf32> to vector<8xf32>
    %86 = vector.shape_cast %85 : vector<8xf32> to vector<8x1xf32>
    %87 = arith.truncf %84 : vector<8x8xf32> to vector<8x8xbf16>
    %88 = arith.truncf %75 : vector<8x8xf32> to vector<8x8xbf16>
    %cst_25 = arith.constant dense<0.000000e+00> : vector<8x8xf32>
    %89 = tpu.matmul %87, %88, %cst_25 {dimension_numbers = #tpu.dot_dimension_numbers<[1], [0], [0], [1], [0, 0, 1, 1], [], []>} : vector<8x8xbf16>, vector<8x8xbf16>, vector<8x8xf32> -> vector<8x8xf32>
    %90 = tpu.reciprocal %86 {approx = true} : vector<8x1xf32> -> vector<8x1xf32>
    %91 = vector.broadcast %90 : vector<8x1xf32> to vector<8x8xf32>
    %92 = arith.mulf %89, %91 : vector<8x8xf32>
    %93 = arith.truncf %92 : vector<8x8xf32> to vector<8x8xbf16>
    %c0_26 = arith.constant 0 : index
    %c24 = arith.constant 24 : index
    %94 = vector.load %arg7[%c0_26, %c24] : memref<8x32xbf16, #tpu.memory_space<vmem>>, vector<8x8xbf16>
    tpu.vector_store %arg7[%c0_26, %c24], %93 {strides = array<i32>} : memref<8x32xbf16, #tpu.memory_space<vmem>>, vector<8x8xbf16>,
    %c0_27 = arith.constant 0 : index
    %c0_28 = arith.constant 0 : index
    %95 = vector.load %arg7[%c0_27, %c0_28] : memref<8x32xbf16, #tpu.memory_space<vmem>>, vector<8x32xbf16>
    %c0_29 = arith.constant 0 : index
    %c0_30 = arith.constant 0 : index
    %96 = vector.load %arg4[%c0_29, %c0_30] : memref<32x32xbf16, #tpu.memory_space<vmem>>, vector<32x32xbf16>
    %cst_31 = arith.constant dense<0.000000e+00> : vector<8x32xf32>
    %97 = tpu.matmul %95, %96, %cst_31 {dimension_numbers = #tpu.dot_dimension_numbers<[1], [0], [0], [1], [0, 0, 1, 1], [], []>} : vector<8x32xbf16>, vector<32x32xbf16>, vector<8x32xf32> -> vector<8x32xf32>
    %c0_32 = arith.constant 0 : index
    %c0_33 = arith.constant 0 : index
    %98 = vector.load %arg5[%c0_32, %c0_33] : memref<1x32xf32, #tpu.memory_space<vmem>>, vector<1x32xf32>
    %99 = vector.broadcast %98 : vector<1x32xf32> to vector<8x32xf32>
    %100 = arith.addf %97, %99 : vector<8x32xf32>
    %c0_34 = arith.constant 0 : index
    %c0_35 = arith.constant 0 : index
    %c0_36 = arith.constant 0 : index
    %101 = vector.load %arg6[%c0_34, %c0_35, %c0_36] : memref<1x8x32xf32, #tpu.memory_space<vmem>>, vector<1x8x32xf32>
    %102 = vector.shape_cast %101 : vector<1x8x32xf32> to vector<8x32xf32>
    %103 = vector.shape_cast %100 : vector<8x32xf32> to vector<1x8x32xf32>
    tpu.vector_store %arg6[%c0_34, %c0_35, %c0_36], %103 {strides = array<i32>} : memref<1x8x32xf32, #tpu.memory_space<vmem>>, vector<1x8x32xf32>,
    return
  }
  func.func @transform_0(%arg0: i32) -> (i32, i32, i32) {
    %c0_i32 = arith.constant 0 : i32
    %c0_i32_0 = arith.constant 0 : i32
    %c0_i32_1 = arith.constant 0 : i32
    return %arg0, %c0_i32, %c0_i32_0 : i32, i32, i32
  }
  func.func @transform_1(%arg0: i32) -> (i32, i32) {
    %c0_i32 = arith.constant 0 : i32
    %c0_i32_0 = arith.constant 0 : i32
    %c0_i32_1 = arith.constant 0 : i32
    return %c0_i32, %c0_i32_0 : i32, i32
  }
  func.func @transform_2(%arg0: i32) -> (i32, i32) {
    %c0_i32 = arith.constant 0 : i32
    %c0_i32_0 = arith.constant 0 : i32
    %c0_i32_1 = arith.constant 0 : i32
    return %c0_i32, %c0_i32_0 : i32, i32
  }
  func.func @transform_3(%arg0: i32) -> (i32, i32) {
    %c0_i32 = arith.constant 0 : i32
    %c0_i32_0 = arith.constant 0 : i32
    %c0_i32_1 = arith.constant 0 : i32
    return %c0_i32, %c0_i32_0 : i32, i32
  }
  func.func @transform_4(%arg0: i32) -> (i32, i32) {
    %c0_i32 = arith.constant 0 : i32
    %c0_i32_0 = arith.constant 0 : i32
    %c0_i32_1 = arith.constant 0 : i32
    return %c0_i32, %c0_i32_0 : i32, i32
  }
  func.func @transform_5(%arg0: i32) -> (i32, i32, i32) {
    %c0_i32 = arith.constant 0 : i32
    %c0_i32_0 = arith.constant 0 : i32
    %c0_i32_1 = arith.constant 0 : i32
    return %arg0, %c0_i32, %c0_i32_0 : i32, i32, i32
  }
}

</mosaic_0001>

<bundles_post_ra>
// kernel: tpu_custom_call.1
= control target key start
LH: loop header
LB: loop body
LE: loop exit
PB: predicated region body
PF: predicated region fallthrough
CT: control target
= control target key end

     0   :  { %10 = vsyncpa [#allocation4], 0  ;;  %s1669_s0 = inlined_call_operand.hbm [shape: bf16[2,8,32], index: 0, kind: input, shape index: {}]   ;;  %s1670_s1 = inlined_call_operand.hbm [shape: bf16[32,96], index: 1, kind: input, shape index: {}]   ;;  %s1671_s2 = inlined_call_operand.vmem [shape: f32[1,96], index: 2, kind: input, shape index: {}]   ;;  %s1672_s3 = inlined_call_operand.hbm [shape: bf16[32,32], index: 3, kind: input, shape index: {}]   ;;  %s1673_s4 = inlined_call_operand.vmem [shape: f32[1,32], index: 4, kind: input, shape index: {}]   ;;  %s1674_s5 = inlined_call_operand.hbm [shape: f32[2,8,32], index: 5, kind: output, shape index: {}]  }
   0x1   :  { %12 = vsyncpa [#allocation4 + $0x1], 0 }
   0x2   :  { %13 = vsyncpa [#allocation7], 0 }
   0x3   :  { %14 = vsyncpa [#allocation5], 0 }
   0x4   :  { %16 = vsyncpa [#allocation5 + $0x1], 0  ;;  %s1412_s18 = smov 0   ;;  %s1414_s19 = smov 0  }
   0x5   :  { %s1416_s20 = smov 0   ;;  %s1418_s21 = smov 0  }
   0x6 LB: > { %s1433_s22 = sadd.s32 4294967295, %s1358_s21   ;;  %s981_s23 = sadd.s32 4294967294, %s1358_s21   ;;  %s1358_s21 = sphi %s1418_s21, %s1696_s21   ;;  %s1354_s20 = sphi %s1416_s20, %s1695_s20   ;;  %s1350_s19 = sphi %s1414_s19, %s1694_s19   ;;  %s1346_s18 = sphi %s1412_s18, %s1693_s18  }
   0x7   : > { %p42_p0 = scmp.ne.s32.totalorder %s1350_s19, %s1346_s18  ;;  %p1675_p1 = scmp.eq.s32.totalorder %s1433_s22, 0 }
   0x8   : > { %p156_p3 = scmp.eq.s32.totalorder %s981_s23, 1  ;;  %p982_p5 = scmp.ge.s32.totalorder %s1358_s21, 1 }
   0x9   : > { %p1442_p4 = por %p1675_p1, %p42_p0  ;;  %p163_p7 = scmp.lt.s32.totalorder %s1358_s21, 3 }
   0xa   : > { %p1447_p6 = por %p156_p3, %p42_p0  ;;  %s1360_s27 = smov [#allocation6]  }
   0xb   : > { %s1679_s24 = scalar_select %p1442_p4, 1, 0 }
   0xc   : > { %s1680_s25 = scalar_select %p1447_p6, 1, 0 }
   0xd   : > { %p1452_p8 = pnand %p982_p5, %p163_p7  ;;  %s175_s28 = sshll.u32 %s1360_s27, 4  ;;  %s176_s28 = int_to_ptr.vmem [resolvable:$true] %s175_s28 }
   0xe   : > { %s1361_s30 = smov [#allocation8]   ;;  %s1221_s7 = scalar_lea.vmem %s176_s28, 256 }
   0xf   : > { %s1681_s26 = scalar_select %p1452_p8, 1, 0 }
  0x10   : > { %p1117_p9 = pneg %p1452_p8  ;;  %s191_s6 = sshll.u32 %s1361_s30, 4  ;;  %s192_s6 = int_to_ptr.vmem [resolvable:$true] %s191_s6 }
  0x11   : > { %p1222_p13 = scmp.ne.s32.totalorder %s176_s28, %s1221_s7  ;;  %p1229_p5 = scmp.lt.s32.totalorder %s176_s28, %s176_s28 }
  0x12   : > { %p1461_p11 = pnand %p1117_p9, %p1675_p1  ;;  %p1230_p7 = scmp.lt.s32.totalorder %s1221_s7, %s1221_s7 }
  0x14   : > { %p1212_p12 = pneg %p1461_p11  ;;  %p1231_p10 = por %p1230_p7, %p1229_p5 }
  0x16   : > { %p1224_p0 = pnand %p1222_p13, %p1212_p12 }
  0x18   : > { %p1225_p3 = pneg %p1224_p0 }
  0x1a   : > { %p1232_p9 = pnand %p1231_p10, %p1225_p3 }
  0x1c   : > { %1235 = shalt.err (!%p1232_p9)
}
  0x1d   : > { %s1362_s8 = smov 64   ;;  %s1363_s9 = smov 4  }
  0x1e   : > { %1120 = dma.hbm_to_vmem [thread:$0]  (!%p1461_p11), %s1670_s1, 256, %s176_s28, [#allocation7], %s1362_s8, %s1362_s8, %s1363_s9  }
  0x1f   : > { %s1247_s12 = scalar_lea.vmem %s192_s6, 256  ;;  %p1255_p2 = scmp.lt.s32.totalorder %s192_s6, %s192_s6 }
  0x20   : > { %p1248_p1 = scmp.ne.s32.totalorder %s192_s6, %s1247_s12  ;;  %p1256_p6 = scmp.lt.s32.totalorder %s1247_s12, %s1247_s12 }
  0x22   : > { %p1250_p13 = pnand %p1248_p1, %p1212_p12  ;;  %p1257_p5 = por %p1256_p6, %p1255_p2 }
  0x24   : > { %p1251_p0 = pneg %p1250_p13 }
  0x26   : > { %p1258_p10 = pnand %p1257_p5, %p1251_p0 }
  0x28   : > { %1261 = shalt.err (!%p1258_p10)
}
  0x29   : > { %1123 = dma.hbm_to_vmem [thread:$0]  (!%p1461_p11), %s1672_s3, 256, %s192_s6, [#allocation7], %s1362_s8, %s1362_s8, %s1363_s9  }
  0x2a   : > { %s1484_s15 = sadd.s32 1, %s1358_s21   ;;  %s29_s16 = sadd.s32 1, %s1354_s20 }
  0x2b   : > { %s26_s17 = ssub.s32 %s1358_s21, %s1484_s15  ;;  %p36_p1 = scmp.ne.s32.totalorder %s1354_s20, %s1350_s19 }
  0x2c   : > { %p27_p2 = scmp.eq.s32.totalorder %s26_s17, 0  ;;  %p37_p6 = scmp.eq.s32.totalorder %s1358_s21, 0 }
  0x2d   : > { %p1683_p12 = scmp.eq.s32.totalorder %s1433_s22, 1  ;;  %p1134_p7 = scmp.lt.s32.totalorder %s1358_s21, 2 }
  0x2e   : > { %s1500_s27 = scalar_select %p27_p2, %s1354_s20, %s29_s16  }
  0x2f   : > { %p1494_p3 = por %p1683_p12, %p36_p1  ;;  %p38_p9 = por %p37_p6, %p36_p1 }
  0x30   : > { %s208_s28 = sand.u32 1, %s1354_s20   ;;  %s987_s30 = sshll.u32 %s1358_s21, 6 }
  0x31   : > { %s1684_s23 = scalar_select %p1494_p3, 1, 0 }
  0x32   : > { %s986_s29 = sshll.u32 %s208_s28, 2  ;;  %s1507_s8 = scalar_lea.hbm %s1669_s0, %s987_s30 }
  0x33   : > { %s212_s9 = scalar_lea.vmem [#allocation3], %s986_s29  ;;  %p1509_p11 = pnand %p1134_p7, %p38_p9 }
  0x34   : > { %s219_s10 = sshll.u32 %s212_s9, 4  ;;  %s209_s12 = scalar_lea.sflag [#allocation4], %s208_s28  ;;  %s220_s10 = int_to_ptr.vmem [resolvable:$true] %s219_s10 }
  0x35   : > { %s1262_s13 = scalar_lea.hbm %s1507_s8, 64  ;;  %p1264_p0 = pneg %p1509_p11 }
  0x36   : > { %p1263_p13 = scmp.ne.s32.totalorder %s1507_s8, %s1262_s13  ;;  %s1267_s17 = scalar_lea.hbm %s1669_s0, 128 }
  0x37   : > { %p1268_p1 = scmp.lt.s32.totalorder %s1507_s8, %s1669_s0  ;;  %p1269_p2 = scmp.lt.s32.totalorder %s1267_s17, %s1262_s13 }
  0x38   : > { %p1265_p5 = pnand %p1264_p0, %p1263_p13 }
  0x39   : > { %p1270_p6 = por %p1269_p2, %p1268_p1 }
  0x3a   : > { %p1266_p10 = pneg %p1265_p5 }
  0x3c   : > { %p1271_p12 = pnand %p1270_p6, %p1266_p10 }
  0x3e   : > { %1274 = shalt.err (!%p1271_p12)
}
  0x3f   : > { %s1275_s6 = scalar_lea.vmem %s220_s10, 64  ;;  %s1364_s28 = smov [#allocation3]  }
  0x40   : > { %p1276_p7 = scmp.ne.s32.totalorder %s220_s10, %s1275_s6  ;;  %s1280_s7 = sshll.u32 %s1364_s28, 4  ;;  %s1281_s7 = int_to_ptr.vmem [resolvable:$false] %s1280_s7 }
  0x41   : > { %s1282_s9 = scalar_lea.vmem %s1281_s7, 128  ;;  %p1283_p13 = scmp.lt.s32.totalorder %s220_s10, %s1281_s7 }
  0x42   : > { %p1278_p9 = pnand %p1276_p7, %p1264_p0  ;;  %p1284_p5 = scmp.lt.s32.totalorder %s1282_s9, %s1275_s6 }
  0x44   : > { %p1279_p3 = pneg %p1278_p9  ;;  %p1285_p4 = por %p1284_p5, %p1283_p13 }
  0x46   : > { %p1286_p8 = pnand %p1285_p4, %p1279_p3 }
  0x48   : > { %1289 = shalt.err (!%p1286_p8)
}
  0x49   : > { %1127 = dma.hbm_to_vmem [thread:$0]  (!%p1509_p11), %s1507_s8, 64, %s220_s10, %s209_s12  }
  0x4a   : > { %p1686_p10 = scmp.ne.s32.totalorder %s1681_s26, 0 }
  0x4b   : > { %s1530_s13 = sand.u32 (!%p1686_p10), 1, %s1350_s19   ;;  %p1687_p0 = scmp.ne.s32.totalorder (!%p1686_p10), %s1679_s24, 0 }
  0x4c   : > { %228 = sbr.rel (%p1686_p10) target bundleno = 1349 (0x545), region = 40  ;;  %s989_s14 = sshll.u32 (!%p1686_p10), %s1530_s13, 2 }
  0x4d   : > { %s231_s16 = scalar_lea.sflag (!%p1686_p10), [#allocation4], %s1530_s13  ;;  %s234_s17 = scalar_lea.vmem (!%p1686_p10), [#allocation3], %s989_s14 }
  0x51   : > { %1333 = dma.done.wait (%p1687_p0), %s231_s16, 64  }
  0x52   : > { %1335 = vsyncadd (%p1687_p0), %s231_s16, 4294967232  ;;  %p1688_p4 = scmp.eq.s32.totalorder %s1433_s22, 0 }
  0x54   : > { %1337 = dma.done.wait (%p1688_p4), [#allocation7], 512   ;;  %p1689_p8 = pmov %p1688_p4 }
  0x55   : > { %v1365_v0 = vmov 0.0   ;;  %vm1366_vm0 = vmmov 0   ;;  %v1190_v1 = vld [vmem:[#allocation6 + $0x8] sm:$0xff]   ;;  %v1191_v2 = vld [vmem:[#allocation6] sm:$0xff]   ;;  %v270_v3 = vld [vmem:[%s234_s17] sm:$0xf] }
  0x56   : > { %1339 = vsyncadd (%p1689_p8), [#allocation7], 4294966784  ;;  %1041 = vmatprep.subr.bf16.mxu0 %v1365_v0  ;;  %1045 = vmatprep.mubr.msk.bf16.mxu0 %vm1366_vm0, %v1365_v0  ;;  %vm294_vm1 = vcmask 261120   ;;  %v993_v4 = vld [vmem:[%s1671_s2] ss:$0 sm:$0xff]  ;;  %s1367_s8 = smov 120  }
  0x57   : > { %1049 = vmatprep.subr.bf16.mxu1 %v1365_v0  ;;  %1051 = vmatprep.mubr.msk.bf16.mxu1 %vm1366_vm0, %v1365_v0  ;;  %s1368_s10 = smov 96   ;;  %s1369_s11 = smov 80   ;;  %vm342_vm2 = vcmask 64512   ;;  %vm404_vm3 = vcmask 1043456   ;;  %vm451_vm4 = vcmask 60416   ;;  %vm570_vm5 = vcmask 126016  }
  0x58   : > { %1042 = vmatpush3.bf16.msra.mxu0 %v1190_v1  ;;  %s1370_s12 = smov 88   ;;  %s1371_s30 = smov 72   ;;  %vm689_vm6 = vcmask 191616   ;;  %vm808_vm7 = vcmask 257216  }
  0x59   : > { %1043 = vmatprep.subr.bf16.mxu0 %v1365_v0  ;;  %s1372_s29 = smov 112   ;;  %s1373_s6 = smov 104  }
  0x5a   : > { %s1374_s28 = smov 56   ;;  %s1375_s7 = smov 64  }
  0x5b   : > { %s1376_s9 = smov 40   ;;  %s1377_s14 = smov 48  }
  0x5c   : > { %1044 = vmatpush3.bf16.msra.mxu0 %v1191_v2  ;;  %s1378_s16 = smov 8   ;;  %s1379_s17 = smov 16  }
  0x5d   : > { %1055 = vmatprep.subr.bf16.mxu0 %v1365_v0  ;;  %s1380_s24 = smov 24   ;;  %s992_s26 = sshll.u32 %s1530_s13, 3 }
  0x5e   : > { %p1690_p11 = scmp.ne.s32.totalorder %s1684_s23, 0 }
  0x5f   : > { %1046 = vmatmul.mubr.msk.bf16.vlgmr.msra.gmra.mxu0 %vm294_vm1, %v270_v3 }
  0x60   : > { %1057 = vmatprep.mubr.msk.bf16.mxu0 %vm1366_vm0, %v1365_v0 }
 0x11f   : > { %v332_v5 = vpop.f32.mrf.mxu0 }
 0x120   : > { %v333_v6 = vadd.f32 %v993_v4, %v332_v5 }
 0x121   : > { %v1047_v7 = vpop.f32.mrf.mxu0 }
 0x122   : > { %v1556_v8 = vpack.c.bf16 %v333_v6, %v333_v6 }
 0x123   : > { %v335_v9 = vpop.f32.mrf.mxu0 }
 0x124   : > { %453 = vrot.lane.b32.xlu1 %v1556_v8, %s1367_s8  ;;  %340 = vrot.lane.b32.xlu0 %v1556_v8, %s1368_s10 }
 0x125   : > { %v1048_v10 = vpop.f32.mrf.mxu0 }
 0x128   : > { %574 = vrot.lane.b32.xlu1 %v1556_v8, %s1369_s11  ;;  %455 = vrot.lane.b32.xlu0 %v1556_v8, %s1370_s12  ;;  %s1013_s11 = sshll.u32 %s1433_s22, 7  ;;  %s268_s12 = scalar_lea.vmem [#allocation9], %s992_s26 }
 0x12c   : > { %693 = vrot.lane.b32.xlu1 %v1556_v8, %s1371_s30  ;;  %572 = vrot.lane.b32.xlu0 %v1556_v8, %s1372_s29  ;;  %s892_s30 = sshll.u32 %s268_s12, 4  ;;  %s1627_s30 = int_to_ptr.vmem [resolvable:$true] %s892_s30 }
 0x12d   : > { %s1290_s22 = scalar_lea.vmem %s1627_s30, 128 }
 0x12e   : > { %p1291_p3 = scmp.ne.s32.totalorder %s1627_s30, %s1290_s22 }
 0x130   : > { %691 = vrot.lane.b32.xlu0 %v1556_v8, %s1373_s6  ;;  %p1292_p1 = pnand %p1291_p3, %p1690_p11 }
 0x132   : > { %p1293_p2 = pneg %p1292_p1 }
 0x196   : > { %v341_v11 = vpop.permute.xlu0 %340  ;;  %v454_v14 = vpop.permute.xlu1 %453 }
 0x197   : > { %v347_v12 = vsel %vm342_vm2, %v341_v11, 0 }
 0x198   : > { %1050 = vmatpush3.bf16.xpose.msra.mxu1 %v347_v12 }
 0x199   : > { %1061 = vmatprep.subr.bf16.mxu1 %v1365_v0 }
 0x19a   : > { %v456_v13 = vpop.permute.xlu0 %455  ;;  %v575_v16 = vpop.permute.xlu1 %574 }
 0x19b   : > { %v461_v15 = vsel %vm342_vm2, %v456_v13, 0  ;;  %v580_v17 = vsel %vm342_vm2, %v575_v16, 0 }
 0x19e   : > { %v694_v18 = vpop.permute.xlu1 %693  ;;  %v573_v19 = vpop.permute.xlu0 %572 }
 0x19f   : > { %1052 = vmatmul.mubr.msk.bf16.vlgmr.msra.gmra.mxu1 %vm342_vm2, %v1556_v8  ;;  %v699_v20 = vsel %vm342_vm2, %v694_v18, 0 }
 0x1a0   : > { %1062 = vmatpush3.bf16.xpose.msra.mxu1 %v461_v15  ;;  %1063 = vmatprep.mubr.msk.bf16.mxu1 %vm1366_vm0, %v1365_v0 }
 0x1a1   : > { %1073 = vmatprep.subr.bf16.mxu1 %v1365_v0 }
 0x1a2   : > { %v692_v21 = vpop.permute.xlu0 %691 }
 0x1a7   : > { %1064 = vmatmul.mubr.msk.bf16.vlgmr.msra.gmra.mxu1 %vm342_vm2, %v454_v14 }
 0x1a8   : > { %1074 = vmatpush3.bf16.xpose.msra.mxu1 %v580_v17  ;;  %1075 = vmatprep.mubr.msk.bf16.mxu1 %vm1366_vm0, %v1365_v0 }
 0x1a9   : > { %1085 = vmatprep.subr.bf16.mxu1 %v1365_v0 }
 0x1af   : > { %1076 = vmatmul.mubr.msk.bf16.vlgmr.msra.gmra.mxu1 %vm342_vm2, %v573_v19 }
 0x1b0   : > { %1086 = vmatpush3.bf16.xpose.msra.mxu1 %v699_v20  ;;  %1087 = vmatprep.mubr.msk.bf16.mxu1 %vm1366_vm0, %v1365_v0 }
 0x1b1   : > { %1097 = vmatprep.subr.bf16.mxu1 %v1365_v0 }
 0x1b7   : > { %1088 = vmatmul.mubr.msk.bf16.vlgmr.msra.gmra.mxu1 %vm342_vm2, %v692_v21 }
 0x1b8   : > { %1101 = vmatprep.mubr.msk.bf16.mxu1 %vm1366_vm0, %v1365_v0 }
 0x25f   : > { %v383_v22 = vpop.f32.mrf.mxu1 }
 0x260   : > { %v389_v23 = vsel %vm342_vm2, %v383_v22, -inf }
 0x261   : > { %390 = vmax.xlane.f32.xlu1 %v389_v23  ;;  %v1053_v24 = vpop.f32.mrf.mxu1 }
 0x263   : > { %v386_v25 = vpop.f32.mrf.mxu1 }
 0x265   : > { %v1054_v26 = vpop.f32.mrf.mxu1 }
 0x267   : > { %v497_v27 = vpop.f32.mrf.mxu1 }
 0x268   : > { %v503_v28 = vsel %vm342_vm2, %v497_v27, -inf }
 0x269   : > { %504 = vmax.xlane.f32.xlu0 %v503_v28  ;;  %v1065_v29 = vpop.f32.mrf.mxu1 }
 0x26b   : > { %v500_v30 = vpop.f32.mrf.mxu1 }
 0x26d   : > { %v1066_v31 = vpop.f32.mrf.mxu1 }
 0x26f   : > { %v616_v32 = vpop.f32.mrf.mxu1 }
 0x270   : > { %v622_v33 = vsel %vm342_vm2, %v616_v32, -inf }
 0x271   : > { %623 = vmax.xlane.f32.xlu0 %v622_v33  ;;  %v1077_v34 = vpop.f32.mrf.mxu1 }
 0x272   : > { %513 = vrot.lane.b32.xlu1 %v1556_v8, %s1374_s28  ;;  %v1192_v34 = vld [vmem:[#allocation8 + $0x8] sm:$0xff]   ;;  %s1625_s28 = scalar_lea.hbm %s1674_s5, %s1013_s11 }
 0x273   : > { %v619_v35 = vpop.f32.mrf.mxu1  ;;  %1098 = vmatpush3.bf16.msra.mxu1 %v1192_v34 }
 0x274   : > { %1099 = vmatprep.subr.bf16.mxu1 %v1365_v0 }
 0x275   : > { %v1078_v36 = vpop.f32.mrf.mxu1 }
 0x276   : > { %v1193_v36 = vld [vmem:[#allocation8] sm:$0xff]  }
 0x277   : > { %v735_v37 = vpop.f32.mrf.mxu1  ;;  %1100 = vmatpush3.bf16.msra.mxu1 %v1193_v36 }
 0x278   : > { %v741_v41 = vsel %vm342_vm2, %v735_v37, -inf }
 0x279   : > { %v1089_v38 = vpop.f32.mrf.mxu1 }
 0x27b   : > { %v738_v39 = vpop.f32.mrf.mxu1 }
 0x27d   : > { %v1090_v40 = vpop.f32.mrf.mxu1 }
 0x287   : > { %399 = vrot.lane.b32.xlu0 %v1556_v8, %s1375_s7  ;;  %s879_s7 = scalar_lea.sflag [#allocation5], %s1530_s13 }
 0x28b   : > { %751 = vrot.lane.b32.xlu0 %v1556_v8, %s1376_s9  ;;  %s1381_s9 = smov [#allocation9]  }
 0x296   : > { %742 = vmax.xlane.f32.xlu1 %v741_v41 }
 0x2a7   : > { %632 = vrot.lane.b32.xlu1 %v1556_v8, %s1377_s14  ;;  %s1294_s14 = sshll.u32 %s1381_s9, 4  ;;  %s1295_s14 = int_to_ptr.vmem [resolvable:$false] %s1294_s14 }
 0x2a8   : > { %p1297_p6 = scmp.lt.s32.totalorder %s1627_s30, %s1295_s14 }
 0x2ea   : > { %v391_v42 = vpop.xlane.xlu1 %390 }
 0x2eb   : > { %v392_v43 = vsub.f32 %v383_v22, %v391_v42 }
 0x2ed   : > { %v393_v44 = vmul.f32 1.442695, %v392_v43 }
 0x2ee   : > { %v514_v54 = vpop.permute.xlu1 %513 }
 0x2ef   : > { %1194 = vpow2.f32 %v393_v44  ;;  %v519_v56 = vsel %vm404_vm3, %v514_v54, 0 }
 0x2f2   : > { %v505_v45 = vpop.xlane.xlu0 %504 }
 0x2f3   : > { %v506_v46 = vsub.f32 %v497_v27, %v505_v45 }
 0x2f5   : > { %v507_v47 = vmul.f32 1.442695, %v506_v46 }
 0x2f7   : > { %1196 = vpow2.f32 %v507_v47 }
 0x2fa   : > { %v624_v48 = vpop.xlane.xlu0 %623 }
 0x2fb   : > { %v625_v49 = vsub.f32 %v616_v32, %v624_v48  ;;  %v1008_v48 = vld [vmem:[%s1673_s4] ss:$0 sm:$0xff] }
 0x2fc   : > { %v1195_v51 = vpop.eup %1194 }
 0x2fd   : > { %v626_v50 = vmul.f32 1.442695, %v625_v49  ;;  %v398_v55 = vpack.c.bf16 %v1195_v51, %v1195_v51  ;;  %v395_v59 = vsel %vm342_vm2, %v1195_v51, 0.0 }
 0x2fe   : > { %v400_v52 = vpop.permute.xlu0 %399 }
 0x2ff   : > { %1198 = vpow2.f32 %v626_v50  ;;  %v406_v53 = vsel %vm404_vm3, %v400_v52, 0 }
 0x300   : > { %1056 = vmatpush3.bf16.msra.mxu0 %v406_v53 }
 0x301   : > { %1067 = vmatprep.subr.bf16.mxu0 %v1365_v0 }
 0x302   : > { %v752_v5 = vpop.permute.xlu0 %751 }
 0x303   : > { %1058 = vmatmul.mubr.msk.bf16.vlgmr.msra.gmra.mxu0 %vm342_vm2, %v398_v55  ;;  %v757_v7 = vsel %vm404_vm3, %v752_v5, 0 }
 0x304   : > { %v1197_v57 = vpop.eup %1196  ;;  %1068 = vmatpush3.bf16.msra.mxu0 %v519_v56  ;;  %1069 = vmatprep.mubr.msk.bf16.mxu0 %vm1366_vm0, %v1365_v0 }
 0x305   : > { %v509_v58 = vsel %vm342_vm2, %v1197_v57, 0.0  ;;  %1079 = vmatprep.subr.bf16.mxu0 %v1365_v0  ;;  %v512_v60 = vpack.c.bf16 %v1197_v57, %v1197_v57 }
 0x306   : > { %510 = vadd.xlane.f32.xlu1 %v509_v58 }
 0x30a   : > { %396 = vadd.xlane.f32.xlu1 %v395_v59 }
 0x30b   : > { %1070 = vmatmul.mubr.msk.bf16.vlgmr.msra.gmra.mxu0 %vm342_vm2, %v512_v60 }
 0x30c   : > { %v1199_v61 = vpop.eup %1198  ;;  %1081 = vmatprep.mubr.msk.bf16.mxu0 %vm1366_vm0, %v1365_v0 }
 0x30d   : > { %v628_v62 = vsel %vm342_vm2, %v1199_v61, 0.0  ;;  %v631_v6 = vpack.c.bf16 %v1199_v61, %v1199_v61 }
 0x30e   : > { %629 = vadd.xlane.f32.xlu0 %v628_v62 }
 0x31f   : > { %v743_v63 = vpop.xlane.xlu1 %742 }
 0x320   : > { %v744_v1 = vsub.f32 %v735_v37, %v743_v63 }
 0x322   : > { %v745_v2 = vmul.f32 1.442695, %v744_v1 }
 0x323   : > { %v633_v3 = vpop.permute.xlu1 %632 }
 0x324   : > { %1200 = vpow2.f32 %v745_v2  ;;  %v638_v4 = vsel %vm404_vm3, %v633_v3, 0 }
 0x325   : > { %1080 = vmatpush3.bf16.msra.mxu0 %v638_v4 }
 0x326   : > { %1091 = vmatprep.subr.bf16.mxu0 %v1365_v0 }
 0x328   : > { %1082 = vmatmul.mubr.msk.bf16.vlgmr.msra.gmra.mxu0 %vm342_vm2, %v631_v6 }
 0x329   : > { %1092 = vmatpush3.bf16.msra.mxu0 %v757_v7  ;;  %1093 = vmatprep.mubr.msk.bf16.mxu0 %vm1366_vm0, %v1365_v0 }
 0x331   : > { %v1201_v8 = vpop.eup %1200 }
 0x332   : > { %v747_v9 = vsel %vm342_vm2, %v1201_v8, 0.0  ;;  %v750_v10 = vpack.c.bf16 %v1201_v8, %v1201_v8 }
 0x333   : > { %748 = vadd.xlane.f32.xlu0 %v747_v9 }
 0x334   : > { %1094 = vmatmul.mubr.msk.bf16.vlgmr.msra.gmra.mxu0 %vm342_vm2, %v750_v10 }
 0x38f   : > { %v511_v11 = vpop.xlane.xlu1 %510 }
 0x393   : > { %v397_v12 = vpop.xlane.xlu1 %396 }
 0x394   : > { %1202 = vrcp.f32 %v397_v12 }
 0x395   : > { %1204 = vrcp.f32 %v511_v11 }
 0x397   : > { %v630_v27 = vpop.xlane.xlu0 %629 }
 0x398   : > { %1206 = vrcp.f32 %v630_v27 }
 0x3a1   : > { %v1203_v13 = vpop.eup %1202 }
 0x3a2   : > { %v1205_v20 = vpop.eup %1204 }
 0x3a5   : > { %v1207_v29 = vpop.eup %1206 }
 0x3bc   : > { %v749_v28 = vpop.xlane.xlu0 %748 }
 0x3bd   : > { %1208 = vrcp.f32 %v749_v28 }
 0x3c3   : > { %v442_v14 = vpop.f32.mrf.mxu0 }
 0x3c4   : > { %v449_v15 = vmul.f32 %v1203_v13, %v442_v14 }
 0x3c5   : > { %v1059_v16 = vpop.f32.mrf.mxu0 }
 0x3c6   : > { %v450_v17 = vpack.c.bf16 %v449_v15, %v449_v15 }
 0x3c7   : > { %v445_v18 = vpop.f32.mrf.mxu0 }
 0x3c8   : > { %452 = vst.msk [vmem:[#allocation2] sm:$0xf] %vm451_vm4, %v450_v17 }
 0x3c9   : > { %v1060_v19 = vpop.f32.mrf.mxu0 }
 0x3ca   : > { %v1209_v38 = vpop.eup %1208 }
 0x3cb   : > { %v555_v21 = vpop.f32.mrf.mxu0 }
 0x3cc   : > { %v562_v22 = vmul.f32 %v1205_v20, %v555_v21 }
 0x3cd   : > { %v1071_v23 = vpop.f32.mrf.mxu0 }
 0x3ce   : > { %v1016_v24 = vpack.c.bf16 %v562_v22, %v562_v22 }
 0x3cf   : > { %v558_v25 = vpop.f32.mrf.mxu0 }
 0x3d0   : > { %567 = vrot.lane.b32.xlu0 %v1016_v24, %s1378_s16  ;;  %s1296_s16 = scalar_lea.vmem %s1295_s14, 256 }
 0x3d1   : > { %v1072_v26 = vpop.f32.mrf.mxu0  ;;  %p1298_p12 = scmp.lt.s32.totalorder %s1296_s16, %s1290_s22 }
 0x3d3   : > { %p1299_p7 = por %p1298_p12, %p1297_p6 }
 0x3d5   : > { %p1300_p9 = pnand %p1299_p7, %p1293_p2 }
 0x3e8   : > { %v674_v30 = vpop.f32.mrf.mxu0 }
 0x3e9   : > { %v681_v31 = vmul.f32 %v1207_v29, %v674_v30 }
 0x3ea   : > { %v1083_v32 = vpop.f32.mrf.mxu0 }
 0x3eb   : > { %v1017_v33 = vpack.c.bf16 %v681_v31, %v681_v31 }
 0x3ec   : > { %v677_v35 = vpop.f32.mrf.mxu0 }
 0x3ed   : > { %686 = vrot.lane.b32.xlu1 %v1017_v33, %s1379_s17 }
 0x3ee   : > { %v1084_v37 = vpop.f32.mrf.mxu0 }
 0x3f4   : > { %v793_v39 = vpop.f32.mrf.mxu0 }
 0x3f5   : > { %v800_v40 = vmul.f32 %v1209_v38, %v793_v39 }
 0x3f6   : > { %v1095_v41 = vpop.f32.mrf.mxu0 }
 0x3f7   : > { %v1018_v42 = vpack.c.bf16 %v800_v40, %v800_v40 }
 0x3f8   : > { %v796_v43 = vpop.f32.mrf.mxu0 }
 0x3f9   : > { %805 = vrot.lane.b32.xlu1 %v1018_v42, %s1380_s24 }
 0x3fa   : > { %v1096_v44 = vpop.f32.mrf.mxu0 }
 0x442   : > { %v568_v45 = vpop.permute.xlu0 %567 }
 0x443   : > { %571 = vst.msk [vmem:[#allocation2] sm:$0xf] %vm570_vm5, %v568_v45 }
 0x45f   : > { %v687_v46 = vpop.permute.xlu1 %686 }
 0x460   : > { %690 = vst.msk [vmem:[#allocation2] sm:$0xf] %vm689_vm6, %v687_v46 }
 0x46b   : > { %v806_v0 = vpop.permute.xlu1 %805 }
 0x46c   : > { %809 = vst.msk [vmem:[#allocation2] sm:$0xf] %vm808_vm7, %v806_v0 }
 0x473   : > { %v810_v47 = vld [vmem:[#allocation2] sm:$0xf] }
 0x474   : > { %1102 = vmatmul.mubr.msk.bf16.vlgmr.msra.gmra.mxu1 %vm294_vm1, %v810_v47 }
 0x534   : > { %v871_v49 = vpop.f32.mrf.mxu1 }
 0x535   : > { %v872_v50 = vadd.f32 %v1008_v48, %v871_v49 }
 0x536   : > { %v1103_v51 = vpop.f32.mrf.mxu1 }
 0x537   : > { %877 = vst.msk [vmem:[%s268_s12] sm:$0xff] %vm294_vm1, %v872_v50 }
 0x538   : > { %v874_v52 = vpop.f32.mrf.mxu1 }
 0x539   : > { %1303 = shalt.err (!%p1300_p9)
}
 0x53a   : > { %s1304_s17 = scalar_lea.hbm %s1625_s28, 128  ;;  %s1308_s26 = scalar_lea.hbm %s1674_s5, 256 }
 0x53b   : > { %p1305_p13 = scmp.ne.s32.totalorder %s1625_s28, %s1304_s17  ;;  %p1309_p0 = scmp.lt.s32.totalorder %s1625_s28, %s1674_s5 }
 0x53c   : > { %p1310_p4 = scmp.lt.s32.totalorder %s1308_s26, %s1304_s17 }
 0x53d   : > { %p1306_p5 = pnand %p1305_p13, %p1690_p11 }
 0x53e   : > { %p1311_p8 = por %p1310_p4, %p1309_p0 }
 0x53f   : > { %p1307_p10 = pneg %p1306_p5 }
 0x541   : > { %p1312_p3 = pnand %p1311_p8, %p1307_p10 }
 0x543   : > { %1315 = shalt.err (!%p1312_p3)
}
 0x544   : > { %1115 = dma.vmem_to_hbm [thread:$0]  (%p1690_p11), %s1627_s30, 128, %s1625_s28, %s879_s7   ;;  %v1104_v53 = vpop.f32.mrf.mxu1 }
 0x545 PF: > { %s904_s11 = sand.u32 1, %s1346_s18   ;;  %p1691_p1 = scmp.ne.s32.totalorder %s1680_s25, 0 }
 0x546   : > { %p1692_p2 = scmp.ge.s32.totalorder %s1358_s21, 2  ;;  %s905_s12 = scalar_lea.sflag [#allocation5], %s904_s11 }
 0x548   : > { %p1129_p6 = pnand %p1692_p2, %p1691_p1 }
 0x54a   : > { %p1130_p12 = pneg %p1129_p6 }
 0x54c   : > { %1341 = dma.done.wait (%p1130_p12), %s905_s12, 128  }
 0x54d   : > { %1343 = vsyncadd (%p1130_p12), %s905_s12, 4294967168  ;;  %p19_p7 = scmp.ge.s32.totalorder %s1484_s15, 4   ;;  %s1693_s18 = smov %s1350_s19 }
 0x54e   : > { %s1694_s19 = smov %s1354_s20  ;;  %s1695_s20 = smov %s1500_s27 }
 0x54f   : > { %s1696_s21 = smov %s1484_s15  ;;  %21 = sbr.rel (!%p19_p7) target bundleno = 6 (0x6), region = 93 }
 0x554   :  { %910 = vsyncpa [#allocation4], 1 }
 0x555   :  { %912 = vsyncpa [#allocation4 + $0x1], 1 }
 0x556   :  { %913 = vsyncpa [#allocation7], 1 }
 0x557   :  { %914 = vsyncpa [#allocation5], 1 }
 0x558   :  { %916 = vsyncpa [#allocation5 + $0x1], 1 }

</bundles_post_ra>
